<compile_context>
chip_gen: v7x
topology: tpu7x:2x2x1
jax: 0.10.0
libtpu: 0.0.40
codegen_flags: <defaults>
</compile_context>

<pallas_src>
import functools

import jax
import jax.numpy as jnp
from jax import lax
from jax.experimental import pallas as pl
from jax.experimental.pallas import tpu as pltpu


# ---------------------------------------------------------------------------
# Fused DFSMN kernel
# ---------------------------------------------------------------------------
def _make_dfsmn_kernel(n_layers, look_back, look_ahead, stride_left,
                       stride_right, batch_tile, max_steps, roll_forward):
    Bt, T = batch_tile, max_steps
    N = Bt * T
    # tap distances (mirror the conv1d f_mat layout of the torch layer)
    left_shifts = [(look_back - i) * stride_left for i in range(look_back)]
    right_shifts = [(j + 1) * stride_right for j in range(look_ahead)]

    def _shift_back(p, s):
        # result[r] = p[r - s]   (wrapped rows are zeroed by the caller's mask)
        amt = s if roll_forward else (N - s) % N
        return pltpu.roll(p, amt, 0)

    def _shift_fwd(p, s):
        # result[r] = p[r + s]
        amt = (N - s) % N if roll_forward else s
        return pltpu.roll(p, amt, 0)

    def kernel(seq_len_ref, x_ref, w_hid0_ref, w_hid_rest_ref, b_hid_ref,
               w_mem_ref, f_ref, w_out_ref, b_out_ref, out_ref):
        M = w_mem_ref.shape[-1]
        b0 = pl.program_id(0) * Bt

        # ---- masks built ONCE per grid step at full (N, M) width (hoisted) ----
        t3 = lax.broadcasted_iota(jnp.int32, (Bt, T, 1), 1)   # time within utt
        b3 = lax.broadcasted_iota(jnp.int32, (Bt, T, 1), 0)   # utt within tile
        slen3 = jnp.zeros((Bt, T, 1), jnp.int32)
        for i in range(Bt):                      # small SMEM gather, Bt selects
            slen3 = jnp.where(b3 == i, seq_len_ref[b0 + i], slen3)

        def to_nm(mask3):                        # (Bt,T,1) bool -> (N, M) f32
            m = pl.broadcast_to(mask3.astype(jnp.float32), (Bt, T, M))
            return m.reshape(N, M)

        seq_mask = to_nm(t3 < slen3)
        left_mask = [to_nm(t3 >= s) if s < T else None for s in left_shifts]
        right_mask = [to_nm(t3 < T - s) if s < T else None for s in right_shifts]

        # ---- flattened activation tile, kept resident across all layers ----
        h = x_ref[...].reshape(N, x_ref.shape[-1])            # (N, Dp) f32
        for li in range(n_layers):
            w_hid = w_hid0_ref[...] if li == 0 else w_hid_rest_ref[li - 1]
            hid = jnp.dot(h.astype(jnp.bfloat16), w_hid,       # bf16 x bf16 MXU
                          preferred_element_type=jnp.float32) + b_hid_ref[li]
            hid = jnp.maximum(hid, 0.0)
            if li > 0:                 # upper_bound = 1 for every layer but the first
                hid = jnp.minimum(hid, 1.0)

            p = jnp.dot(hid.astype(jnp.bfloat16), w_mem_ref[li],
                        preferred_element_type=jnp.float32)
            if li > 0:                 # skip connection (in_dim == mem_dim for li > 0)
                p = p + h
            p = p * seq_mask

            f = f_ref[li]                              # (LB + 1 + LA, M), f32
            mem = p * (1.0 + f[look_back:look_back + 1, :])    # residual + cur tap
            for i, s in enumerate(left_shifts):                # past context taps
                if s >= T:
                    continue
                mem = mem + _shift_back(p, s) * left_mask[i] * f[i:i + 1, :]
            for j, s in enumerate(right_shifts):               # future context taps
                if s >= T:
                    continue
                mem = mem + (_shift_fwd(p, s) * right_mask[j]
                             * f[look_back + 1 + j:look_back + 2 + j, :])
            h = mem

        y = jnp.dot(h.astype(jnp.bfloat16), w_out_ref[...],
                    preferred_element_type=jnp.float32) + b_out_ref[...]
        out_ref[...] = y.reshape(out_ref.shape).astype(out_ref.dtype)

    return kernel


def net_forward(params, inputs, seq_len, *, look_back, look_ahead, stride_left,
                stride_right, batch_tile=None, roll_forward=True):
    """Full DFSMN forward (all cFSMN layers + output Linear) in one pallas_call."""
    B, T, in_dim = inputs.shape
    layers = params["layers"]
    n_layers = len(layers)
    H = layers[0]["w_hid"].shape[1]
    M = layers[0]["w_mem"].shape[1]
    O = params["w_out"].shape[1]

    Bt = batch_tile or B
    assert B % Bt == 0, "batch must be divisible by batch_tile"
    assert T % 8 == 0, "max_steps should be a multiple of 8 (sublane tile)"
    for i in range(1, n_layers):   # skip connection requires input dim == mem dim
        assert layers[i]["w_hid"].shape[0] == M

    bf16 = jnp.bfloat16
    f32 = jnp.float32

    # ---- pad the input feature dim to a lane-dense multiple of 128 ----
    Dp = max(128, pl.cdiv(in_dim, 128) * 128)
    x_p = inputs.astype(f32)
    if Dp != in_dim:
        x_p = jnp.pad(x_p, ((0, 0), (0, 0), (0, Dp - in_dim)))

    # ---- pack the per-layer weights into a handful of stacked arrays ----
    w_hid0 = layers[0]["w_hid"].astype(bf16)
    if Dp != in_dim:
        w_hid0 = jnp.pad(w_hid0, ((0, Dp - in_dim), (0, 0)))     # zero rows: exact
    if n_layers > 1:
        w_hid_rest = jnp.stack(
            [layers[i]["w_hid"].astype(bf16) for i in range(1, n_layers)])
    else:
        w_hid_rest = jnp.zeros((1, M, H), bf16)                  # unused dummy
    b_hid_all = jnp.stack([lp["b_hid"].astype(f32) for lp in layers])      # (L,1,H)
    w_mem_all = jnp.stack([lp["w_mem"].astype(bf16) for lp in layers])     # (L,H,M)
    f_all = jnp.stack([jnp.concatenate(
        [lp["f_left"], lp["f_cur"], lp["f_right"]], axis=0).astype(f32)
        for lp in layers])                                                 # (L,LB+1+LA,M)
    w_out = params["w_out"].astype(bf16)
    b_out = params["b_out"].astype(f32)

    def _x_map(g, seq_ref):
        return (g, 0, 0)

    def _const_spec(shape):
        zeros = (0,) * len(shape)
        return pl.BlockSpec(shape, lambda g, seq_ref, _z=zeros: _z)

    kernel = _make_dfsmn_kernel(n_layers, look_back, look_ahead, stride_left,
                                stride_right, Bt, T, roll_forward)

    out = pl.pallas_call(
        kernel,
        out_shape=jax.ShapeDtypeStruct((B, T, O), jnp.float32),
        grid_spec=pltpu.PrefetchScalarGridSpec(
            num_scalar_prefetch=1,
            grid=(B // Bt,),
            in_specs=[pl.BlockSpec((Bt, T, Dp), _x_map),
                      _const_spec(w_hid0.shape),
                      _const_spec(w_hid_rest.shape),
                      _const_spec(b_hid_all.shape),
                      _const_spec(w_mem_all.shape),
                      _const_spec(f_all.shape),
                      _const_spec(w_out.shape),
                      _const_spec(b_out.shape)],
            out_specs=pl.BlockSpec((Bt, T, O), _x_map),
        ),
        compiler_params=pltpu.CompilerParams(
            dimension_semantics=("parallel",)),
    )(seq_len.astype(jnp.int32), x_p, w_hid0, w_hid_rest, b_hid_all,
      w_mem_all, f_all, w_out, b_out)

    return out, seq_len


# ---------------------------------------------------------------------------
# pltpu.roll direction probe (keeps FIR shift direction robust across versions)
# ---------------------------------------------------------------------------
def _detect_roll_forward():
    """True iff pltpu.roll follows np.roll convention: roll(x, 1, 0)[r] == x[r-1]."""
    def probe(x_ref, o_ref):
        o_ref[...] = pltpu.roll(x_ref[...], 1, 0)

    x = jnp.broadcast_to(jnp.arange(8, dtype=jnp.float32)[:, None], (8, 128))
    y = pl.pallas_call(
        probe, out_shape=jax.ShapeDtypeStruct((8, 128), jnp.float32))(x)
    return bool(float(y[1, 0]) == 0.0)


# ---------------------------------------------------------------------------
# Parameter construction (deterministic, mirrors the torch __init__ shapes).
# Matmul weights are stored in bf16 (the canonical parameter values); biases
# and FIR coefficients stay f32.
# ---------------------------------------------------------------------------
def _xavier_uniform(key, shape, gain):
    fan_in, fan_out = shape[0], shape[1]
    bound = gain * jnp.sqrt(6.0 / (fan_in + fan_out))
    return jax.random.uniform(key, shape, jnp.float32, -bound, bound)


def _linear_init(key, in_dim, out_dim, bias=True, w_dtype=jnp.float32):
    kw, kb = jax.random.split(key)
    bound = 1.0 / jnp.sqrt(in_dim)
    w = jax.random.uniform(kw, (in_dim, out_dim), jnp.float32,
                           -bound, bound).astype(w_dtype)
    b = (jax.random.uniform(kb, (1, out_dim), jnp.float32, -bound, bound)
         if bias else None)
    return w, b


def init_net_params(key, input_dim, output_dim, fsmn_layers, hidden_dim,
                    memory_dim, look_back, look_ahead):
    layers = []
    for i in range(fsmn_layers):
        in_dim = input_dim if i == 0 else memory_dim
        key, k1, k2, k3, k4, k5 = jax.random.split(key, 6)
        w_hid, b_hid = _linear_init(k1, in_dim, hidden_dim, bias=True,
                                    w_dtype=jnp.bfloat16)
        w_mem, _ = _linear_init(k2, hidden_dim, memory_dim, bias=False,
                                w_dtype=jnp.bfloat16)
        layers.append({
            "w_hid": w_hid,
            "b_hid": b_hid,
            "w_mem": w_mem,
            "f_left": _xavier_uniform(k3, (look_back, memory_dim), 0.5),
            "f_cur": _xavier_uniform(k4, (1, memory_dim), 0.5),
            "f_right": _xavier_uniform(k5, (look_ahead, memory_dim), 0.5),
        })
    key, ko = jax.random.split(key)
    w_out, b_out = _linear_init(ko, memory_dim, output_dim, bias=True,
                                w_dtype=jnp.bfloat16)
    return {"layers": layers, "w_out": w_out, "b_out": b_out}


# ---------------------------------------------------------------------------
# Pure-JAX reference (mirrors the PyTorch module) for validation.
# Uses the same (bf16-representable) weight values, computed in f32.
# ---------------------------------------------------------------------------
def _reference_forward(params, inputs, seq_len, look_back, look_ahead,
                       stride_left, stride_right):
    hi = lax.Precision.HIGHEST
    f32 = jnp.float32
    B, T, _ = inputs.shape
    mask = (jnp.arange(T)[None, :] < seq_len[:, None]).astype(f32)[..., None]
    h = inputs.astype(f32)
    for i, lp in enumerate(params["layers"]):
        hid = jnp.maximum(
            jnp.einsum("btd,dh->bth", h, lp["w_hid"].astype(f32), precision=hi)
            + lp["b_hid"].astype(f32), 0.0)
        if i > 0:
            hid = jnp.minimum(hid, 1.0)
        p = jnp.einsum("bth,hm->btm", hid, lp["w_mem"].astype(f32), precision=hi)
        if i > 0:
            p = p + h
        p = p * mask
        mem = p + p * lp["f_cur"]
        for k in range(look_back):
            s = (look_back - k) * stride_left
            if s >= T:
                continue
            shifted = jnp.pad(p, ((0, 0), (s, 0), (0, 0)))[:, :T, :]
            mem = mem + shifted * lp["f_left"][k]
        for j in range(look_ahead):
            s = (j + 1) * stride_right
            if s >= T:
                continue
            shifted = jnp.pad(p, ((0, 0), (0, s), (0, 0)))[:, s:, :]
            mem = mem + shifted * lp["f_right"][j]
        h = mem
    return (jnp.einsum("btm,mo->bto", h, params["w_out"].astype(f32), precision=hi)
            + params["b_out"].astype(f32))


# ---------------------------------------------------------------------------
# main
# ---------------------------------------------------------------------------
if __name__ == "__main__":
    INPUT_DIM = 64            # zero-padded to 128 inside net_forward (lane dense)
    OUTPUT_DIM = 128          # multiple of 128 -> lane-dense output stores
    FSMN_LAYERS = 3
    HIDDEN_DIM = 128
    MEMORY_DIM = 128
    LOOK_BACK = 4
    LOOK_AHEAD = 1
    STRIDE_L = 2
    STRIDE_R = 1
    B, T = 8, 64
    BATCH_TILE = 2            # 4 grid steps -> >=2 per TC on v7x, DMA pipelines

    key = jax.random.PRNGKey(0)
    k_params, k_x = jax.random.split(key)
    params = init_net_params(k_params, INPUT_DIM, OUTPUT_DIM, FSMN_LAYERS,
                             HIDDEN_DIM, MEMORY_DIM, LOOK_BACK, LOOK_AHEAD)
    x = jax.random.normal(k_x, (B, T, INPUT_DIM), jnp.float32)
    seq_len = jnp.array([64, 37, 64, 18, 55, 64, 9, 48], dtype=jnp.int32)

    roll_forward = _detect_roll_forward()

    fwd = jax.jit(functools.partial(
        net_forward, look_back=LOOK_BACK, look_ahead=LOOK_AHEAD,
        stride_left=STRIDE_L, stride_right=STRIDE_R,
        batch_tile=BATCH_TILE, roll_forward=roll_forward))
    out, out_len = fwd(params, x, seq_len)
    jax.block_until_ready(out)

    assert out.shape == (B, T, OUTPUT_DIM)
    assert out_len.shape == (B,)

    # validate against the pure-JAX f32 reference (same bf16-representable
    # weight values; the residual error is the in-kernel bf16 activation cast
    # + MXU accumulation, expected ~1e-2 or below)
    ref = _reference_forward(params, x, seq_len, LOOK_BACK, LOOK_AHEAD,
                             STRIDE_L, STRIDE_R)
    max_err = float(jnp.max(jnp.abs(out - ref)))
    assert max_err < 5e-2, f"kernel/reference mismatch: max abs err = {max_err}"

    print("KERNEL_OK")
</pallas_src>

<mosaic_0001>
module attributes {stable_mosaic.version = 11 : i64} {
  func.func @probe(%arg0: memref<8x128xf32, #tpu.memory_space<vmem>>, %arg1: memref<8x128xf32, #tpu.memory_space<vmem>>) attributes {dimension_semantics = [], scalar_prefetch = 0 : i64, scratch_operands = 0 : i64, tpu.core_type = #tpu.core_type<tc>} {
    %c0 = arith.constant 0 : index
    %c0_0 = arith.constant 0 : index
    %0 = vector.load %arg0[%c0, %c0_0] : memref<8x128xf32, #tpu.memory_space<vmem>>, vector<8x128xf32>
    %c1_i32 = arith.constant 1 : i32
    %1 = tpu.dynamic_rotate %0 by %c1_i32 dim 0 : vector<8x128xf32>, i32 -> vector<8x128xf32>
    %c0_1 = arith.constant 0 : index
    %c0_2 = arith.constant 0 : index
    %2 = vector.load %arg1[%c0_1, %c0_2] : memref<8x128xf32, #tpu.memory_space<vmem>>, vector<8x128xf32>
    tpu.vector_store %arg1[%c0_1, %c0_2], %1 {strides = array<i32>} : memref<8x128xf32, #tpu.memory_space<vmem>>, vector<8x128xf32>,
    return
  }
}

</mosaic_0001>

<bundles_post_ra>
// kernel: tpu_custom_call.1
= control target key start
LH: loop header
LB: loop body
LE: loop exit
PB: predicated region body
PF: predicated region fallthrough
CT: control target
= control target key end

     0   :  { %6 = vsyncpa [#allocation3], 0  ;;  %s125_s0 = inlined_call_operand.hbm [shape: f32[8,128], index: 0, kind: input, shape index: {}]   ;;  %s126_s1 = inlined_call_operand.hbm [shape: f32[8,128], index: 1, kind: output, shape index: {}]  }
   0x1   :  { %7 = vsyncpa [#allocation4], 0  ;;  %s89_s6 = smov [#allocation2]   ;;  %s41_s10 = scalar_lea.hbm %s125_s0, 128 }
   0x2   :  { %s14_s7 = sshll.u32 %s89_s6, 4  ;;  %p42_p0 = scmp.ne.s32.totalorder %s125_s0, %s41_s10  ;;  %s15_s7 = int_to_ptr.vmem [resolvable:$true] %s14_s7 }
   0x3   :  { %p45_p1 = scmp.lt.u32.totalorder %s41_s10, %s125_s0 }
   0x5   :  { %p47_p2 = pnand %p45_p1, %p42_p0 }
   0x7   :  { %50 = shalt.err (!%p47_p2)
}
   0x8   :  { %s51_s15 = scalar_lea.vmem %s15_s7, 128  ;;  %p56_p4 = scmp.lt.s32.totalorder %s15_s7, %s15_s7 }
   0x9   :  { %p52_p3 = scmp.ne.s32.totalorder %s15_s7, %s51_s15  ;;  %p57_p5 = scmp.lt.s32.totalorder %s51_s15, %s51_s15 }
   0xb   :  { %p58_p6 = por %p57_p5, %p56_p4 }
   0xd   :  { %p59_p7 = pnand %p58_p6, %p52_p3 }
   0xf   :  { %62 = shalt.err (!%p59_p7)
}
  0x10   :  { %17 = dma.hbm_to_vmem [thread:$0]  %s125_s0, 128, %s15_s7, [#allocation3]  }
  0x11   :  { %85 = dma.done.wait [#allocation3], 128  }
  0x12   :  { %86 = vsyncadd [#allocation3], 4294967168  ;;  %s90_s18 = smov [#allocation5]   ;;  %v21_v0 = vld [vmem:[#allocation2] sm:$0xff] }
  0x13   :  { %s30_s19 = sshll.u32 %s90_s18, 4  ;;  %v22_v1 = vrot.slane %v21_v0, 7  ;;  %s31_s19 = int_to_ptr.vmem [resolvable:$true] %s30_s19 }
  0x14   :  { %s63_s20 = scalar_lea.vmem %s31_s19, 128  ;;  %p68_p9 = scmp.lt.s32.totalorder %s31_s19, %s31_s19 }
  0x15   :  { %23 = vst [vmem:[#allocation5] sm:$0xff] %v22_v1  ;;  %p64_p8 = scmp.ne.s32.totalorder %s31_s19, %s63_s20  ;;  %p69_p10 = scmp.lt.s32.totalorder %s63_s20, %s63_s20 }
  0x17   :  { %p70_p11 = por %p69_p10, %p68_p9 }
  0x19   :  { %p71_p12 = pnand %p70_p11, %p64_p8 }
  0x1b   :  { %74 = shalt.err (!%p71_p12)
}
  0x1c   :  { %s75_s23 = scalar_lea.hbm %s126_s1, 128 }
  0x1d   :  { %p76_p13 = scmp.ne.s32.totalorder %s126_s1, %s75_s23  ;;  %p79_p0 = scmp.lt.u32.totalorder %s75_s23, %s126_s1 }
  0x1f   :  { %p81_p1 = pnand %p79_p0, %p76_p13 }
  0x21   :  { %84 = shalt.err (!%p81_p1)
}
  0x22   :  { %33 = dma.vmem_to_hbm [thread:$0]  %s31_s19, 128, %s126_s1, [#allocation4]  }
  0x23   :  { %87 = dma.done.wait [#allocation4], 128  }
  0x24   :  { %88 = vsyncadd [#allocation4], 4294967168 }
  0x25   :  { %37 = vsyncpa [#allocation3], 1 }
  0x26   :  { %38 = vsyncpa [#allocation4], 1 }

</bundles_post_ra>
